<compile_context>
chip_gen: v6e
topology: v6e:2x2x1
jax: 0.10.0
libtpu: 0.0.40
codegen_flags: <defaults>
</compile_context>

<pallas_src>
import functools

import jax
import jax.numpy as jnp
from jax.experimental import pallas as pl
from jax.experimental.pallas import tpu as pltpu

EPS = 1e-6          # matches REINFORCE eps default
_NEG_BIG = -1e30    # bias for padded (fake) actions: never wins softmax/argmax


def _round_up(x: int, m: int) -> int:
    return (x + m - 1) // m * m


def _policy_kernel(obs_t_ref, w1_t_ref, b1_t_ref, w2_t_ref, b2_t_ref, noise_ref,
                   logp_ref, act_ref, *, deterministic: bool):
    # Transposed layout: batch on lanes, actions on sublanes.
    #   obs_t_ref: [d_obs, TILE_B]   w1_t_ref: [H, d_obs]   b1_t_ref: [H, 1]
    #   w2_t_ref:  [A_pad, H]        b2_t_ref: [A_pad, 1]   noise_ref: [A_pad, TILE_B]
    x_t = obs_t_ref[...]

    # Hidden layer: Linear + ReLU (MXU, f32 accumulate).
    h_t = jnp.dot(w1_t_ref[...], x_t, preferred_element_type=jnp.float32) + b1_t_ref[...]
    h_t = jnp.maximum(h_t, 0.0)                                   # [H, TILE_B]

    # Output layer -> logits.  Padded action rows carry bias -1e30.
    logits_t = (jnp.dot(w2_t_ref[...], h_t, preferred_element_type=jnp.float32)
                + b2_t_ref[...])                                   # [A_pad, TILE_B]

    # Numerically-stable softmax over the (padded, sublane) action axis.
    m = jnp.max(logits_t, axis=0, keepdims=True)                  # [1, TILE_B]
    e = jnp.exp(logits_t - m)                                     # pad rows -> exactly 0
    denom = jnp.sum(e, axis=0, keepdims=True)
    probs_t = e * pl.reciprocal(denom, approx=False)              # exact: 1e-5 parity

    # Only log(prob + eps) goes to HBM; probs reconstructed in the wrapper.
    logp_ref[...] = jnp.log(probs_t + EPS).astype(logp_ref.dtype)

    if deterministic:
        # argmax(probs) == argmax(logits) (softmax is monotone).
        scores = logits_t
    else:
        # Exponential race: argmax_i p_i / E_i ~ Categorical(p).  Reuses `e`
        # (proportional to p); E ~ Exp(1) is drawn in the wrapper.
        scores = e * pl.reciprocal(noise_ref[...], approx=True)

    # argmax over the sublane axis via max + iota + min (first-max tie-break).
    best = jnp.max(scores, axis=0, keepdims=True)                 # [1, TILE_B]
    row_idx = jax.lax.broadcasted_iota(jnp.int32, scores.shape, 0)
    cand = jnp.where(scores == best, row_idx, jnp.iinfo(jnp.int32).max)
    act = jnp.min(cand, axis=0).astype(jnp.int32)                 # [TILE_B], lanes
    act_ref[...] = act.reshape((1, act.shape[0]))                 # lane-dense row store


@functools.partial(jax.jit, static_argnames=("deterministic",))
def reinforce_forward(obs, params, key, deterministic=False):
    """Mirrors REINFORCE.forward: returns (action [B,1] int32, prob_dist, log_probs)."""
    w1, b1, w2, b2 = params
    B, d_obs = obs.shape
    H = w1.shape[1]
    A = w2.shape[1]

    # Action axis lives on sublanes -> pad to a multiple of 8 (not 128).
    A_pad = _round_up(A, 8)

    # --- VMEM-aware batch tile (honest budget: weights + blocks + intermediates) ---
    itm_rows = H + 4 * A_pad                      # h, logits, e, probs, scores (live f32)
    blk_rows = 2 * (d_obs + 2 * A_pad + 1)        # double-buffered obs/noise/logp/act blocks
    bytes_per_col = 4 * (itm_rows + blk_rows)
    weight_bytes = 2 * 4 * (H * d_obs + H + A_pad * H + A_pad)   # resident, x2 buffers
    block_budget = 8 << 20                        # conservative: safe on v5e/v6e/v7x
    tile_cap = max(128, ((block_budget - weight_bytes) // bytes_per_col) // 128 * 128)

    TILE_B = max(128, min(512, tile_cap, _round_up(B, 128)))
    # v7x megacore: keep >= 2 grid steps whenever the batch allows it.
    b_pad_min = _round_up(B, 128)
    if b_pad_min >= 256:
        TILE_B = min(TILE_B, max(128, (b_pad_min // 2) // 128 * 128))
    B_pad = _round_up(B, TILE_B)
    num_tiles = B_pad // TILE_B

    # --- Transposed, padded operands (one XLA transpose/pad in HBM) ----------------
    obs_t = jnp.pad(obs, ((0, B_pad - B), (0, 0))).T                    # (d_obs, B_pad)
    w1_t = w1.T                                                         # (H, d_obs)
    b1_t = b1.reshape(-1, 1)                                            # (H, 1)
    w2_t = jnp.pad(w2.T, ((0, A_pad - A), (0, 0)))                      # (A_pad, H)
    b2_t = jnp.pad(b2.reshape(-1, 1), ((0, A_pad - A), (0, 0)),
                   constant_values=_NEG_BIG)                            # (A_pad, 1)

    if deterministic:
        noise_t = jnp.ones((A_pad, B_pad), jnp.float32)                 # unused in kernel
    else:
        # TODO(synk): pltpu.prng_* would fuse this draw in-kernel, but it has no
        # interpret/CPU lowering; Exp(1) noise is drawn host-side with jax.random.
        noise_t = jnp.maximum(
            jax.random.exponential(key, (A_pad, B_pad), dtype=jnp.float32), 1e-20)

    kernel = functools.partial(_policy_kernel, deterministic=deterministic)

    vmem_limit = int(min(32 << 20,
                         max(8 << 20,
                             weight_bytes + bytes_per_col * TILE_B + (4 << 20))))

    logp_t, act_row = pl.pallas_call(
        kernel,
        out_shape=(
            jax.ShapeDtypeStruct((A_pad, B_pad), jnp.float32),   # log(prob + eps), transposed
            jax.ShapeDtypeStruct((1, B_pad), jnp.int32),         # action, lane-dense row
        ),
        grid_spec=pltpu.PrefetchScalarGridSpec(
            num_scalar_prefetch=0,
            grid=(num_tiles,),
            in_specs=[
                pl.BlockSpec((d_obs, TILE_B), lambda i: (0, i)),
                pl.BlockSpec((H, d_obs),      lambda i: (0, 0)),   # VMEM-resident
                pl.BlockSpec((H, 1),          lambda i: (0, 0)),
                pl.BlockSpec((A_pad, H),      lambda i: (0, 0)),
                pl.BlockSpec((A_pad, 1),      lambda i: (0, 0)),
                pl.BlockSpec((A_pad, TILE_B), lambda i: (0, i)),
            ],
            out_specs=(
                pl.BlockSpec((A_pad, TILE_B), lambda i: (0, i)),
                pl.BlockSpec((1, TILE_B),     lambda i: (0, i)),
            ),
        ),
        compiler_params=pltpu.CompilerParams(
            dimension_semantics=("parallel",),      # shard batch tiles across TCs
            vmem_limit_bytes=vmem_limit,
        ),
        cost_estimate=pl.CostEstimate(
            flops=2 * B_pad * (d_obs * H + H * A_pad),
            transcendentals=2 * B_pad * A_pad + B_pad,
            bytes_accessed=4 * (B_pad * d_obs + A_pad * B_pad
                                + H * d_obs + H + A_pad * H + A_pad
                                + A_pad * B_pad + B_pad),
        ),
    )(obs_t, w1_t, b1_t, w2_t, b2_t, noise_t)

    logp = logp_t[:A, :B].T                      # (B, A)  == log(prob_dist + eps)
    probs = jnp.exp(logp) - EPS                  # reconstruct prob_dist (saves one HBM slab)
    action = act_row[0, :B, None]                # (B, 1) int32 (keepdim / unsqueeze)
    return action, probs, logp


def init_policy_params(key, d_obs, hidden, n_actions):
    """Deterministic synthetic init for the MLP policy (PyTorch-Linear-like scale)."""
    k1, k2, k3, k4 = jax.random.split(key, 4)
    s1 = 1.0 / jnp.sqrt(d_obs)
    s2 = 1.0 / jnp.sqrt(hidden)
    w1 = jax.random.uniform(k1, (d_obs, hidden), jnp.float32, -s1, s1)
    b1 = jax.random.uniform(k2, (1, hidden), jnp.float32, -s1, s1)
    w2 = jax.random.uniform(k3, (hidden, n_actions), jnp.float32, -s2, s2)
    b2 = jax.random.uniform(k4, (1, n_actions), jnp.float32, -s2, s2)
    return w1, b1, w2, b2


# TODO(synk): episode bookkeeping (states/actions/log_probabilities lists) and the
# optimizer update() step are host-side training glue, not part of the forward kernel.

if __name__ == "__main__":
    B, D_OBS, HIDDEN, N_ACTIONS = 8, 32, 32, 8

    root = jax.random.PRNGKey(0)
    k_param, k_obs, k_sample = jax.random.split(root, 3)

    params = init_policy_params(k_param, D_OBS, HIDDEN, N_ACTIONS)
    obs = jax.random.normal(k_obs, (B, D_OBS), dtype=jnp.float32)

    # Deterministic path (argmax fused in-kernel).
    act_det, probs, logp = reinforce_forward(obs, params, k_sample, deterministic=True)
    # Stochastic path (Categorical sample via fused exponential-race argmax).
    act_stoch, probs_s, logp_s = reinforce_forward(obs, params, k_sample, deterministic=False)

    jax.block_until_ready((act_det, act_stoch, probs, logp, probs_s, logp_s))

    # Sanity checks against a plain-JAX reference of the same policy.
    w1, b1, w2, b2 = params
    h_ref = jnp.maximum(obs @ w1 + b1, 0.0)
    logits_ref = h_ref @ w2 + b2
    probs_ref = jax.nn.softmax(logits_ref, axis=-1)

    assert probs.shape == (B, N_ACTIONS) and logp.shape == (B, N_ACTIONS)
    assert jnp.allclose(probs, probs_ref, atol=1e-5)
    assert jnp.allclose(probs_s, probs_ref, atol=1e-5)
    assert jnp.allclose(logp, jnp.log(probs_ref + EPS), atol=1e-5)
    assert act_det.shape == (B, 1) and act_stoch.shape == (B, 1)
    assert jnp.all(act_det[:, 0] == jnp.argmax(probs_ref, axis=-1))
    assert jnp.all((act_stoch >= 0) & (act_stoch < N_ACTIONS))

    print("KERNEL_OK")
</pallas_src>

<mosaic_0001>
module attributes {stable_mosaic.version = 11 : i64} {
  func.func @_policy_kernel(%arg0: i32, %arg1: memref<32x128xf32, #tpu.memory_space<vmem>>, %arg2: memref<32x32xf32, #tpu.memory_space<vmem>>, %arg3: memref<32x1xf32, #tpu.memory_space<vmem>>, %arg4: memref<8x32xf32, #tpu.memory_space<vmem>>, %arg5: memref<8x1xf32, #tpu.memory_space<vmem>>, %arg6: memref<8x128xf32, #tpu.memory_space<vmem>>, %arg7: memref<8x128xf32, #tpu.memory_space<vmem>>, %arg8: memref<1x128xi32, #tpu.memory_space<vmem>>) attributes {dimension_semantics = [#tpu.dimension_semantics<parallel>], iteration_bounds = array<i64: 1>, scalar_prefetch = 0 : i64, scratch_operands = 0 : i64, tpu.core_type = #tpu.core_type<tc>, window_params = [{transform_indices = @transform_0, window_bounds = array<i64: 32, 128>}, {pipeline_mode = #tpu.pipeline_mode<synchronous>, transform_indices = @transform_1, window_bounds = array<i64: 32, 32>}, {pipeline_mode = #tpu.pipeline_mode<synchronous>, transform_indices = @transform_2, window_bounds = array<i64: 32, 1>}, {pipeline_mode = #tpu.pipeline_mode<synchronous>, transform_indices = @transform_3, window_bounds = array<i64: 8, 32>}, {pipeline_mode = #tpu.pipeline_mode<synchronous>, transform_indices = @transform_4, window_bounds = array<i64: 8, 1>}, {transform_indices = @transform_5, window_bounds = array<i64: 8, 128>}, {transform_indices = @transform_6, window_bounds = array<i64: 8, 128>}, {transform_indices = @transform_7, window_bounds = array<i64: 1, 128>}]} {
    %c0 = arith.constant 0 : index
    %c0_0 = arith.constant 0 : index
    %0 = vector.load %arg1[%c0, %c0_0] : memref<32x128xf32, #tpu.memory_space<vmem>>, vector<32x128xf32>
    %c0_1 = arith.constant 0 : index
    %c0_2 = arith.constant 0 : index
    %1 = vector.load %arg2[%c0_1, %c0_2] : memref<32x32xf32, #tpu.memory_space<vmem>>, vector<32x32xf32>
    %cst = arith.constant dense<0.000000e+00> : vector<32x128xf32>
    %2 = tpu.matmul %1, %0, %cst {dimension_numbers = #tpu.dot_dimension_numbers<[1], [0], [0], [1], [0, 0, 1, 1], [], []>} : vector<32x32xf32>, vector<32x128xf32>, vector<32x128xf32> -> vector<32x128xf32>
    %c0_3 = arith.constant 0 : index
    %c0_4 = arith.constant 0 : index
    %3 = vector.load %arg3[%c0_3, %c0_4] : memref<32x1xf32, #tpu.memory_space<vmem>>, vector<32x1xf32>
    %4 = vector.broadcast %3 : vector<32x1xf32> to vector<32x128xf32>
    %5 = arith.addf %2, %4 : vector<32x128xf32>
    %cst_5 = arith.constant 0.000000e+00 : f32
    %6 = vector.broadcast %cst_5 : f32 to vector<32x128xf32>
    %7 = arith.maximumf %5, %6 : vector<32x128xf32>
    %c0_6 = arith.constant 0 : index
    %c0_7 = arith.constant 0 : index
    %8 = vector.load %arg4[%c0_6, %c0_7] : memref<8x32xf32, #tpu.memory_space<vmem>>, vector<8x32xf32>
    %cst_8 = arith.constant dense<0.000000e+00> : vector<8x128xf32>
    %9 = tpu.matmul %8, %7, %cst_8 {dimension_numbers = #tpu.dot_dimension_numbers<[1], [0], [0], [1], [0, 0, 1, 1], [], []>} : vector<8x32xf32>, vector<32x128xf32>, vector<8x128xf32> -> vector<8x128xf32>
    %c0_9 = arith.constant 0 : index
    %c0_10 = arith.constant 0 : index
    %10 = vector.load %arg5[%c0_9, %c0_10] : memref<8x1xf32, #tpu.memory_space<vmem>>, vector<8x1xf32>
    %11 = vector.broadcast %10 : vector<8x1xf32> to vector<8x128xf32>
    %12 = arith.addf %9, %11 : vector<8x128xf32>
    %cst_11 = arith.constant dense<0xFF800000> : vector<128xf32>
    %13 = vector.multi_reduction <maximumf>, %12, %cst_11 [0] : vector<8x128xf32> to vector<128xf32>
    %14 = vector.shape_cast %13 : vector<128xf32> to vector<1x128xf32>
    %15 = vector.broadcast %14 : vector<1x128xf32> to vector<8x128xf32>
    %16 = arith.subf %12, %15 : vector<8x128xf32>
    %17 = math.exp %16 : vector<8x128xf32>
    %cst_12 = arith.constant dense<0.000000e+00> : vector<128xf32>
    %18 = vector.multi_reduction <add>, %17, %cst_12 [0] : vector<8x128xf32> to vector<128xf32>
    %19 = vector.shape_cast %18 : vector<128xf32> to vector<1x128xf32>
    %20 = tpu.reciprocal %19 : vector<1x128xf32> -> vector<1x128xf32>
    %21 = vector.broadcast %20 : vector<1x128xf32> to vector<8x128xf32>
    %22 = arith.mulf %17, %21 : vector<8x128xf32>
    %cst_13 = arith.constant 9.99999997E-7 : f32
    %23 = vector.broadcast %cst_13 : f32 to vector<8x128xf32>
    %24 = arith.addf %22, %23 : vector<8x128xf32>
    %25 = math.log %24 : vector<8x128xf32>
    %c0_14 = arith.constant 0 : index
    %c0_15 = arith.constant 0 : index
    %26 = vector.load %arg7[%c0_14, %c0_15] : memref<8x128xf32, #tpu.memory_space<vmem>>, vector<8x128xf32>
    tpu.vector_store %arg7[%c0_14, %c0_15], %25 {strides = array<i32>} : memref<8x128xf32, #tpu.memory_space<vmem>>, vector<8x128xf32>,
    %cst_16 = arith.constant dense<0xFF800000> : vector<128xf32>
    %27 = vector.multi_reduction <maximumf>, %12, %cst_16 [0] : vector<8x128xf32> to vector<128xf32>
    %28 = vector.shape_cast %27 : vector<128xf32> to vector<1x128xf32>
    %29 = tpu.iota {dimensions = array<i32: 0>} : vector<8x128xi32>
    %30 = vector.broadcast %28 : vector<1x128xf32> to vector<8x128xf32>
    %31 = arith.cmpf oeq, %12, %30 : vector<8x128xf32>
    %c2147483647_i32 = arith.constant 2147483647 : i32
    %32 = vector.broadcast %c2147483647_i32 : i32 to vector<8x128xi32>
    %33 = arith.select %31, %29, %32 : vector<8x128xi1>, vector<8x128xi32>
    %cst_17 = arith.constant dense<2147483647> : vector<128xi32>
    %34 = vector.multi_reduction <minsi>, %33, %cst_17 [0] : vector<8x128xi32> to vector<128xi32>
    %35 = vector.shape_cast %34 : vector<128xi32> to vector<1x128xi32>
    %c0_18 = arith.constant 0 : index
    %c0_19 = arith.constant 0 : index
    %36 = vector.load %arg8[%c0_18, %c0_19] : memref<1x128xi32, #tpu.memory_space<vmem>>, vector<1x128xi32>
    tpu.vector_store %arg8[%c0_18, %c0_19], %35 {strides = array<i32>} : memref<1x128xi32, #tpu.memory_space<vmem>>, vector<1x128xi32>,
    return
  }
  func.func @transform_0(%arg0: i32) -> (i32, i32) {
    %c0_i32 = arith.constant 0 : i32
    %c0_i32_0 = arith.constant 0 : i32
    return %c0_i32, %arg0 : i32, i32
  }
  func.func @transform_1(%arg0: i32) -> (i32, i32) {
    %c0_i32 = arith.constant 0 : i32
    %c0_i32_0 = arith.constant 0 : i32
    %c0_i32_1 = arith.constant 0 : i32
    return %c0_i32, %c0_i32_0 : i32, i32
  }
  func.func @transform_2(%arg0: i32) -> (i32, i32) {
    %c0_i32 = arith.constant 0 : i32
    %c0_i32_0 = arith.constant 0 : i32
    %c0_i32_1 = arith.constant 0 : i32
    return %c0_i32, %c0_i32_0 : i32, i32
  }
  func.func @transform_3(%arg0: i32) -> (i32, i32) {
    %c0_i32 = arith.constant 0 : i32
    %c0_i32_0 = arith.constant 0 : i32
    %c0_i32_1 = arith.constant 0 : i32
    return %c0_i32, %c0_i32_0 : i32, i32
  }
  func.func @transform_4(%arg0: i32) -> (i32, i32) {
    %c0_i32 = arith.constant 0 : i32
    %c0_i32_0 = arith.constant 0 : i32
    %c0_i32_1 = arith.constant 0 : i32
    return %c0_i32, %c0_i32_0 : i32, i32
  }
  func.func @transform_5(%arg0: i32) -> (i32, i32) {
    %c0_i32 = arith.constant 0 : i32
    %c0_i32_0 = arith.constant 0 : i32
    return %c0_i32, %arg0 : i32, i32
  }
  func.func @transform_6(%arg0: i32) -> (i32, i32) {
    %c0_i32 = arith.constant 0 : i32
    %c0_i32_0 = arith.constant 0 : i32
    return %c0_i32, %arg0 : i32, i32
  }
  func.func @transform_7(%arg0: i32) -> (i32, i32) {
    %c0_i32 = arith.constant 0 : i32
    %c0_i32_0 = arith.constant 0 : i32
    return %c0_i32, %arg0 : i32, i32
  }
}

</mosaic_0001>

<bundles_post_ra>
// kernel: reinforce_forward.1
= control target key start
LH: loop header
LB: loop body
LE: loop exit
PB: predicated region body
PF: predicated region fallthrough
CT: control target
= control target key end

     0   :  { %vm57_vm0 = vcmask 261120   ;;  %v336_v2 = vmov 0   ;;  %v337_v14 = vmov 0.0   ;;  %vm338_vm1 = vmmov 0   ;;  %s432_s0 = inlined_call_operand.vmem [shape: f32[32,128], index: 0, kind: input, shape index: {}]   ;;  %s433_s5 = inlined_call_operand.vmem [shape: f32[8,128], index: 5, kind: input, shape index: {}]   ;;  %s434_s1 = inlined_call_operand.vmem [shape: f32[32,32], index: 1, kind: input, shape index: {}]   ;;  %s435_s2 = inlined_call_operand.vmem [shape: f32[32,1], index: 2, kind: input, shape index: {}]   ;;  %s436_s4 = inlined_call_operand.vmem [shape: f32[8,1], index: 4, kind: input, shape index: {}]   ;;  %s437_s3 = inlined_call_operand.vmem [shape: f32[8,32], index: 3, kind: input, shape index: {}]   ;;  %s438_s7 = inlined_call_operand.vmem [shape: s32[1,128], index: 7, kind: output, shape index: {1}]   ;;  %s439_s6 = inlined_call_operand.vmem [shape: f32[8,128], index: 6, kind: output, shape index: {0}]  }
   0x1   :  { %v28_v0 = vld [vmem:[%s432_s0 + $0x18] sm:$0xff]  ;;  %v27_v1 = vld [vmem:[%s432_s0 + $0x10] sm:$0xff]  ;;  %328 = vset.pattern.permute.xlu0 %v336_v2  ;;  %329 = vset.pattern.permute.xlu1 %v336_v2  ;;  %v29_v3 = vld [vmem:[%s434_s1] sm:$0xff]  ;;  %v260_v39 = vlaneseq }
   0x2   :  { %300 = vmatprep.subr.mxu0 %v28_v0  ;;  %v26_v4 = vld [vmem:[%s432_s0 + $0x8] sm:$0xff]  ;;  %308 = vmatprep.mubr.msk.f32.mxu0 %vm57_vm0, %v29_v3  ;;  %v36_v5 = vld [vmem:[%s435_s2 + $0x18] sm:$0xff]  ;;  %v25_v7 = vld [vmem:[%s432_s0] sm:$0xff] }
   0x3   :  { %301 = vmatpush3.msra.mxu0 %v28_v0  ;;  %54 = vperm.xlu0 %328, %v36_v5   ;;  %v34_v6 = vld [vmem:[%s435_s2 + $0x8] sm:$0xff]  ;;  %v35_v8 = vld [vmem:[%s435_s2 + $0x10] sm:$0xff]  ;;  %v33_v9 = vld [vmem:[%s435_s2] sm:$0xff]  ;;  %v261_v42 = vshrl.u32 %v260_v39, 7 }
   0x4   :  { %302 = vmatprep.subr.mxu0 %v27_v1  ;;  %44 = vperm.xlu1 %329, %v34_v6   ;;  %v30_v10 = vld [vmem:[%s434_s1 + $0x8] sm:$0xff]  ;;  %v31_v11 = vld [vmem:[%s434_s1 + $0x10] sm:$0xff]  ;;  %v160_v12 = vld [vmem:[%s436_s4] sm:$0xff] }
   0x5   :  { %303 = vmatpush3.msra.mxu0 %v27_v1  ;;  %v32_v13 = vld [vmem:[%s434_s1 + $0x18] sm:$0xff]  ;;  %314 = vmatprep.subr.mxu1 %v337_v14  ;;  %v159_v31 = vld [vmem:[%s437_s3] sm:$0xff] }
   0x6   :  { %304 = vmatprep.subr.mxu0 %v26_v4  ;;  %322 = vmatprep.mubr.msk.f32.mxu1 %vm338_vm1, %v337_v14 }
   0x7   :  { %305 = vmatpush3.msra.mxu0 %v26_v4  ;;  %49 = vperm.xlu0 %328, %v35_v8  }
   0x8   :  { %306 = vmatprep.subr.mxu0 %v25_v7  ;;  %39 = vperm.xlu1 %329, %v33_v9  }
   0x9   :  { %307 = vmatpush3.msra.mxu0 %v25_v7 }
   0xa   :  { %309 = vmatmul.mubr.msk.f32.vlgmr.msra.gmra.mxu0 %vm57_vm0, %v30_v10 }
   0xb   :  { %311 = vmatprep.mubr.msk.f32.mxu0 %vm57_vm0, %v31_v11  ;;  %163 = vperm.xlu0 %328, %v160_v12  }
   0xe   :  { %312 = vmatmul.mubr.msk.f32.gmra.mxu0 %vm57_vm0, %v32_v13 }
  0x7e   :  { %v55_v15 = vpop.permute.xlu0 %54 }
  0x7f   :  { %v45_v16 = vpop.permute.xlu1 %44 }
  0x82   :  { %v50_v20 = vpop.permute.xlu0 %49 }
  0x83   :  { %v40_v22 = vpop.permute.xlu1 %39 }
  0x86   :  { %v164_v32 = vpop.permute.xlu0 %163 }
  0xca   :  { %v310_v17 = vpop.f32.mrf.mxu0 }
  0xcb   :  { %v142_v24 = vadd.f32 %v310_v17, %v45_v16 }
  0xcc   :  { %v136_v18 = vpop.f32.mrf.mxu0 }
  0xcd   :  { %v137_v27 = vadd.f32 %v136_v18, %v40_v22  ;;  %v156_v29 = vmax.f32 %v142_v24, 0.0 }
  0xce   :  { %v313_v19 = vpop.f32.mrf.mxu0 }
  0xcf   :  { %v152_v21 = vadd.f32 %v313_v19, %v55_v15  ;;  %v155_v30 = vmax.f32 %v137_v27, 0.0 }
  0xd0   :  { %v146_v23 = vpop.f32.mrf.mxu0 }
  0xd1   :  { %v158_v25 = vmax.f32 %v152_v21, 0.0  ;;  %v147_v26 = vadd.f32 %v146_v23, %v50_v20 }
  0xd3   :  { %v157_v28 = vmax.f32 %v147_v26, 0.0  ;;  %315 = vmatpush3.msra.mxu1 %v158_v25 }
  0xd4   :  { %316 = vmatprep.subr.mxu1 %v337_v14 }
  0xd5   :  { %317 = vmatpush3.msra.mxu1 %v157_v28 }
  0xd6   :  { %318 = vmatprep.subr.mxu1 %v337_v14 }
  0xd7   :  { %319 = vmatpush3.msra.mxu1 %v156_v29 }
  0xd8   :  { %320 = vmatprep.subr.mxu1 %v337_v14 }
  0xd9   :  { %321 = vmatpush3.msra.mxu1 %v155_v30 }
  0xda   :  { %323 = vmatmul.mubr.msk.f32.vlgmr.msra.gmra.mxu1 %vm57_vm0, %v159_v31 }
 0x19a   :  { %v235_v33 = vpop.f32.mrf.mxu1 }
 0x19b   :  { %v236_v34 = vadd.f32 %v235_v33, %v164_v32 }
 0x19c   :  { %v324_v35 = vpop.f32.mrf.mxu1 }
 0x19d   :  { %v239_v36 = vrot.slane %v236_v34, 4 }
 0x19f   :  { %v240_v37 = vmax.f32 %v236_v34, %v239_v36 }
 0x1a1   :  { %v241_v38 = vrot.slane %v240_v37, 2 }
 0x1a3   :  { %v242_v40 = vmax.f32 %v240_v37, %v241_v38 }
 0x1a5   :  { %v243_v41 = vrot.slane %v242_v40, 1 }
 0x1a7   :  { %v244_v43 = vmax.f32 %v242_v40, %v243_v41 }
 0x1a9   :  { %v245_v44 = vsub.f32 %v236_v34, %v244_v43  ;;  %vm262_vm2 = vcmp.eq.f32.partialorder %v236_v34, %v244_v43 }
 0x1aa   :  { %v263_v45 = vsel %vm262_vm2, %v261_v42, 2147483647 }
 0x1ab   :  { %v246_v46 = vmul.f32 1.442695, %v245_v44  ;;  %v264_v47 = vrot.slane %v263_v45, 4 }
 0x1ad   :  { %330 = vpow2.f32 %v246_v46  ;;  %vm265_vm3 = vcmp.lt.s32.totalorder %v263_v45, %v264_v47 }
 0x1ae   :  { %v266_v48 = vsel %vm265_vm3, %v263_v45, %v264_v47 }
 0x1af   :  { %v267_v49 = vrot.slane %v266_v48, 2 }
 0x1b1   :  { %vm268_vm4 = vcmp.lt.s32.totalorder %v266_v48, %v267_v49 }
 0x1b2   :  { %v269_v50 = vsel %vm268_vm4, %v266_v48, %v267_v49 }
 0x1b3   :  { %v270_v51 = vrot.slane %v269_v50, 1 }
 0x1b5   :  { %vm271_vm5 = vcmp.lt.s32.totalorder %v269_v50, %v270_v51 }
 0x1b6   :  { %v272_v52 = vsel %vm271_vm5, %v269_v50, %v270_v51 }
 0x1b7   :  { %273 = vst [vmem:[%s438_s7] sm:$0x1] %v272_v52 }
 0x1ba   :  { %v331_v53 = vpop.eup %330 }
 0x1bb   :  { %v248_v54 = vrot.slane %v331_v53, 4 }
 0x1bd   :  { %v249_v55 = vadd.f32 %v331_v53, %v248_v54 }
 0x1bf   :  { %v250_v56 = vrot.slane %v249_v55, 2 }
 0x1c1   :  { %v251_v57 = vadd.f32 %v250_v56, %v249_v55 }
 0x1c3   :  { %v252_v58 = vrot.slane %v251_v57, 1 }
 0x1c5   :  { %v253_v59 = vadd.f32 %v252_v58, %v251_v57 }
 0x1c7   :  { %332 = vrcp.f32 %v253_v59 }
 0x1d4   :  { %v333_v60 = vpop.eup %332 }
 0x1d5   :  { %v255_v61 = vmul.f32 %v333_v60, %v331_v53 }
 0x1d7   :  { %v256_v62 = vadd.f32 1e-06, %v255_v61 }
 0x1d9   :  { %334 = vlog2.f32 %v256_v62 }
 0x1e6   :  { %v335_v63 = vpop.eup %334 }
 0x1e7   :  { %v258_v0 = vmul.f32 0.6931472, %v335_v63 }
 0x1e9   :  { %259 = vst [vmem:[%s439_s6] sm:$0xff] %v258_v0 }

</bundles_post_ra>
